<compile_context>
chip_gen: v7x
topology: tpu7x:2x2x1
jax: 0.10.0
libtpu: 0.0.40
codegen_flags: <defaults>
</compile_context>

<pallas_src>
import functools

import jax
import jax.numpy as jnp
from jax.experimental import pallas as pl
from jax.experimental.pallas import tpu as pltpu

BN_EPS = 1e-5


def _conv3x3_rowmm_kernel(x_ref, t_ref, scale_ref, shift_ref,
                          o_ref, sum_ref, sq_ref, lhs_ref, *, fuse_bn_relu):
    """One grid step = `nb` samples: (optional BN+ReLU) -> 3x3 conv + bias.

    Row-planar layout: one spatial row (W pixels x C channels) = lane dim.
      x_ref:     (nb, H, W*Cin)        input rows (f32 for conv1, bf16 for conv2)
      t_ref:     (3*W*Cin+1, W*Cout)   stacked banded weights + tiled-bias row (bf16)
      scale_ref: (1, W*Cin)            fused-BN scale, tiled over W (f32)
      shift_ref: (1, W*Cin)            fused-BN shift, tiled over W (f32)
      o_ref:     (nb, H, W*Cout)       conv output incl. bias, pre-BN
      sum_ref:   (1, 1, W*Cout)        per-(w,cout) sum over this block's rows
      sq_ref:    (1, 1, W*Cout)        per-(w,cout) sum of squares
      lhs_ref:   (nb*H, 3*W*Cin+1)     bf16 scratch: H-im2col bands + ones col
    """
    nb, H, wcin = x_ref.shape
    wcout = o_ref.shape[2]
    ktot = 3 * wcin + 1

    x = x_ref[...].astype(jnp.float32)
    if fuse_bn_relu:
        # Elementwise BN+ReLU prologue in f32 (v5e has no bf16 VPU path).
        a = jnp.maximum(x * scale_ref[...] + shift_ref[...], 0.0)
    else:
        a = x
    a = a.astype(lhs_ref.dtype)                          # (nb, H, wcin) bf16

    zrow = jnp.zeros((1, wcin), lhs_ref.dtype)
    # Folded conv bias: constant-1 lhs column matching the bias row of t_ref.
    lhs_ref[:, 3 * wcin:ktot] = jnp.ones((nb * H, 1), lhs_ref.dtype)
    for n in range(nb):                                  # nb is small & static
        r = n * H
        an = a[n]                                        # (H, wcin)
        # band dy=0 : input rows y-1 (row 0 zero-padded)
        lhs_ref[r:r + 1, 0:wcin] = zrow
        lhs_ref[r + 1:r + H, 0:wcin] = an[0:H - 1]
        # band dy=1 : input rows y
        lhs_ref[r:r + H, wcin:2 * wcin] = an
        # band dy=2 : input rows y+1 (row H-1 zero-padded)
        lhs_ref[r:r + H - 1, 2 * wcin:3 * wcin] = an[1:H]
        lhs_ref[r + H - 1:r + H, 2 * wcin:3 * wcin] = zrow

    # Single MXU matmul: K = 3*W*Cin + 1, bf16 inputs, f32 accumulation.
    acc = jnp.dot(lhs_ref[...], t_ref[...],
                  preferred_element_type=jnp.float32)    # (nb*H, wcout)

    o_ref[...] = acc.reshape(nb, H, wcout).astype(o_ref.dtype)
    # Fused BatchNorm batch-statistic partials (from the exact f32 acc).
    sum_ref[0] = jnp.sum(acc, axis=0, keepdims=True)
    sq_ref[0] = jnp.sum(acc * acc, axis=0, keepdims=True)


def _banded_weight_stacked(w_hwio, bias, W):
    """(3,3,Cin,Cout), (Cout,) -> (3*W*Cin + 1, W*Cout) bf16.

    Row index dy*(W*Cin) + w'*Cin + ci holds w[dy, w'-w+1, ci, co] for the
    output column w*Cout + co when 0 <= w'-w+1 < 3 (else 0): the dx taps,
    channel mixing and W-direction zero padding are folded into the matmul
    operand.  The final row is the bias tiled over W (paired with the
    constant-1 lhs column).  Built with a scatter, not 9 dense products.
    """
    _, _, Cin, Cout = w_hwio.shape
    ws = jnp.arange(W)
    # One padded pixel on each side of w' absorbs the W-direction padding.
    t_pad = jnp.zeros((3, W + 2, Cin, W, Cout), jnp.float32)
    for dx in range(3):
        # indexed shape is (W, 3, Cin, Cout); (3, Cin, Cout) broadcasts in.
        t_pad = t_pad.at[:, ws + dx, :, ws, :].set(
            w_hwio[:, dx].astype(jnp.float32))
    t = t_pad[:, 1:W + 1].reshape(3 * W * Cin, W * Cout)
    bias_row = jnp.tile(bias.astype(jnp.float32), W).reshape(1, W * Cout)
    return jnp.concatenate([t, bias_row], axis=0).astype(jnp.bfloat16)


def _samples_per_block(N):
    # v7x has 2 TensorCores/chip: keep >= 2 "parallel" grid steps when N
    # allows (grid=(2,) minimum).  On single-TC v5e/v6e the extra step costs
    # ~0.35us (noise), while nb = N//2 samples per block keeps the matmul's
    # M = nb*H as large as possible for MXU row utilization.
    if N >= 2 and N % 2 == 0:
        return N // 2
    return 1


def _conv3x3(x_rows, t_stacked, scale, shift, *, fuse_bn_relu, nb, out_dtype):
    """Fused (optional BN+ReLU) + 3x3 conv (stride 1, pad 1) + bias.

    x_rows: (N, H, W*Cin).  Returns (y_rows, per-block sums, sum-of-squares).
    """
    N, H, WCin = x_rows.shape
    KTOT, WCout = t_stacked.shape
    C = scale.shape[0]
    W = WCin // C
    G = N // nb

    s_t = jnp.tile(scale.astype(jnp.float32), W).reshape(1, WCin)
    h_t = jnp.tile(shift.astype(jnp.float32), W).reshape(1, WCin)

    kern = functools.partial(_conv3x3_rowmm_kernel, fuse_bn_relu=fuse_bn_relu)
    return pl.pallas_call(
        kern,
        out_shape=(
            jax.ShapeDtypeStruct((N, H, WCout), out_dtype),
            jax.ShapeDtypeStruct((G, 1, WCout), jnp.float32),
            jax.ShapeDtypeStruct((G, 1, WCout), jnp.float32),
        ),
        grid=(G,),
        in_specs=[
            pl.BlockSpec((nb, H, WCin), lambda g: (g, 0, 0)),
            pl.BlockSpec((KTOT, WCout), lambda g: (0, 0)),
            pl.BlockSpec((1, WCin), lambda g: (0, 0)),
            pl.BlockSpec((1, WCin), lambda g: (0, 0)),
        ],
        out_specs=(
            pl.BlockSpec((nb, H, WCout), lambda g: (g, 0, 0)),
            pl.BlockSpec((1, 1, WCout), lambda g: (g, 0, 0)),
            pl.BlockSpec((1, 1, WCout), lambda g: (g, 0, 0)),
        ),
        scratch_shapes=[pltpu.VMEM((nb * H, KTOT), jnp.bfloat16)],
        # Per-step footprint is ~0.2 MiB -> default scoped VMEM is plenty.
        compiler_params=pltpu.CompilerParams(
            dimension_semantics=("parallel",)),
    )(x_rows, t_stacked, s_t, h_t)


def _bn_scale_shift_from_stats(psum, psq, gamma, beta, count, W, Cout):
    """Training-mode BatchNorm2d scale/shift from fused per-block partials.

    Note: variance uses E[x^2]-E[x]^2 in f32 (clamped at 0).  Fine at these
    magnitudes; TODO(synk): use a mean-subtracted second pass / Welford for
    large N*H*W or large activations (catastrophic cancellation).
    """
    total = psum.reshape(-1, W, Cout).sum(axis=(0, 1))
    total_sq = psq.reshape(-1, W, Cout).sum(axis=(0, 1))
    mean = total / count
    var = jnp.maximum(total_sq / count - mean * mean, 0.0)   # biased variance
    scale = gamma / jnp.sqrt(var + BN_EPS)
    shift = beta - mean * scale
    return scale, shift


def conv_block_forward_nhwc(x_nhwc, params):
    """NHWC fast path (no layout transposes in the hot loop)."""
    N, H, W, Cin = x_nhwc.shape
    Cout = params["w1"].shape[-1]
    cnt = float(N * H * W)
    x_rows = x_nhwc.reshape(N, H, W * Cin).astype(jnp.float32)

    t1 = _banded_weight_stacked(params["w1"], params["b1"], W)
    t2 = _banded_weight_stacked(params["w2"], params["b2"], W)

    nb = _samples_per_block(N)
    ident_s = jnp.ones((Cin,), jnp.float32)
    ident_b = jnp.zeros((Cin,), jnp.float32)

    # conv1 (+ fused batch-stat partials); y1 stored in bf16.
    y1, ps1, pq1 = _conv3x3(x_rows, t1, ident_s, ident_b,
                            fuse_bn_relu=False, nb=nb, out_dtype=jnp.bfloat16)
    s1, sh1 = _bn_scale_shift_from_stats(ps1, pq1, params["gamma1"],
                                         params["beta1"], cnt, W, Cout)
    # fused BN1+ReLU1 prologue + conv2 (+ fused batch-stat partials).
    y2, ps2, pq2 = _conv3x3(y1, t2, s1, sh1,
                            fuse_bn_relu=True, nb=nb, out_dtype=jnp.float32)
    s2, sh2 = _bn_scale_shift_from_stats(ps2, pq2, params["gamma2"],
                                         params["beta2"], cnt, W, Cout)

    # BN2 + ReLU epilogue in plain jnp: XLA fuses the per-channel affine +
    # ReLU into the reshape / output transpose (a 3rd pallas_call would be
    # pure launch overhead at this size).
    y2 = y2.reshape(N, H, W, Cout)
    return jnp.maximum(y2 * s2 + sh2, 0.0)


@jax.jit
def conv_block_forward(x_nchw, params):
    # NCHW (PyTorch) -> NHWC row-planar, and back.  Pure layout glue.
    x = jnp.transpose(x_nchw, (0, 2, 3, 1))
    out = conv_block_forward_nhwc(x, params)
    return jnp.transpose(out, (0, 3, 1, 2))


def _reference(x_nchw, params):
    # Pure-JAX f32 reference (lax conv) for a correctness sanity check.
    x = jnp.transpose(x_nchw, (0, 2, 3, 1)).astype(jnp.float32)

    def conv(a, w, b):
        y = jax.lax.conv_general_dilated(
            a, w, window_strides=(1, 1), padding=((1, 1), (1, 1)),
            dimension_numbers=("NHWC", "HWIO", "NHWC"))
        return y + b[None, None, None, :]

    def bn_relu(y, gamma, beta):
        m = jnp.mean(y, axis=(0, 1, 2))
        v = jnp.var(y, axis=(0, 1, 2))
        return jnp.maximum((y - m) / jnp.sqrt(v + BN_EPS) * gamma + beta, 0.0)

    y = conv(x, params["w1"], params["b1"])
    y = bn_relu(y, params["gamma1"], params["beta1"])
    y = conv(y, params["w2"], params["b2"])
    y = bn_relu(y, params["gamma2"], params["beta2"])
    return jnp.transpose(y, (0, 3, 1, 2))


def init_params(key, in_ch, out_ch):
    # Deterministic synthetic init; weights stored in HWIO (== permuted OIHW).
    ks = jax.random.split(key, 8)
    return {
        "w1": jax.random.normal(ks[0], (3, 3, in_ch, out_ch), jnp.float32) * 0.1,
        "b1": jax.random.normal(ks[1], (out_ch,), jnp.float32) * 0.1,
        "gamma1": 1.0 + 0.1 * jax.random.normal(ks[2], (out_ch,), jnp.float32),
        "beta1": 0.1 * jax.random.normal(ks[3], (out_ch,), jnp.float32),
        "w2": jax.random.normal(ks[4], (3, 3, out_ch, out_ch), jnp.float32) * 0.1,
        "b2": jax.random.normal(ks[5], (out_ch,), jnp.float32) * 0.1,
        "gamma2": 1.0 + 0.1 * jax.random.normal(ks[6], (out_ch,), jnp.float32),
        "beta2": 0.1 * jax.random.normal(ks[7], (out_ch,), jnp.float32),
    }


if __name__ == "__main__":
    key = jax.random.PRNGKey(0)
    k_x, k_p = jax.random.split(key)

    N, C_IN, C_OUT, H, W = 2, 4, 8, 16, 16
    x = jax.random.normal(k_x, (N, C_IN, H, W), jnp.float32)  # NCHW
    params = init_params(k_p, C_IN, C_OUT)

    out = jax.block_until_ready(conv_block_forward(x, params))
    ref = jax.block_until_ready(_reference(x, params))

    assert out.shape == (N, C_OUT, H, W), out.shape
    # Tolerance accounts for bf16 MXU inputs and the bf16 y1 intermediate
    # (f32 accumulation, f32 BN statistics).
    max_err = float(jnp.max(jnp.abs(out - ref)))
    assert jnp.allclose(out, ref, atol=5e-2, rtol=5e-2), (
        f"mismatch vs reference (max abs err {max_err})")

    print("KERNEL_OK")
</pallas_src>

<mosaic_0001>
module attributes {stable_mosaic.version = 11 : i64} {
  func.func @_conv3x3_rowmm_kernel(%arg0: i32, %arg1: memref<1x16x64xf32, #tpu.memory_space<vmem>>, %arg2: memref<193x128xbf16, #tpu.memory_space<vmem>>, %arg3: memref<1x64xf32, #tpu.memory_space<vmem>>, %arg4: memref<1x64xf32, #tpu.memory_space<vmem>>, %arg5: memref<1x16x128xbf16, #tpu.memory_space<vmem>>, %arg6: memref<1x1x128xf32, #tpu.memory_space<vmem>>, %arg7: memref<1x1x128xf32, #tpu.memory_space<vmem>>, %arg8: memref<16x193xbf16, #tpu.memory_space<vmem>>) attributes {dimension_semantics = [#tpu.dimension_semantics<parallel>], iteration_bounds = array<i64: 2>, scalar_prefetch = 0 : i64, scratch_operands = 1 : i64, tpu.core_type = #tpu.core_type<tc>, window_params = [{transform_indices = @transform_0, window_bounds = array<i64: 1, 16, 64>}, {pipeline_mode = #tpu.pipeline_mode<synchronous>, transform_indices = @transform_1, window_bounds = array<i64: 193, 128>}, {pipeline_mode = #tpu.pipeline_mode<synchronous>, transform_indices = @transform_2, window_bounds = array<i64: 1, 64>}, {pipeline_mode = #tpu.pipeline_mode<synchronous>, transform_indices = @transform_3, window_bounds = array<i64: 1, 64>}, {transform_indices = @transform_4, window_bounds = array<i64: 1, 16, 128>}, {transform_indices = @transform_5, window_bounds = array<i64: 1, 1, 128>}, {transform_indices = @transform_6, window_bounds = array<i64: 1, 1, 128>}]} {
    %c0 = arith.constant 0 : index
    %c0_0 = arith.constant 0 : index
    %c0_1 = arith.constant 0 : index
    %0 = vector.load %arg1[%c0, %c0_0, %c0_1] : memref<1x16x64xf32, #tpu.memory_space<vmem>>, vector<1x16x64xf32>
    %1 = arith.truncf %0 : vector<1x16x64xf32> to vector<1x16x64xbf16>
    %cst = arith.constant 0.000000e+00 : bf16
    %2 = vector.broadcast %cst : bf16 to vector<1x64xbf16>
    %cst_2 = arith.constant 1.000000e+00 : bf16
    %3 = vector.broadcast %cst_2 : bf16 to vector<16x1xbf16>
    %c0_3 = arith.constant 0 : index
    %c192 = arith.constant 192 : index
    %4 = vector.load %arg8[%c0_3, %c192] : memref<16x193xbf16, #tpu.memory_space<vmem>>, vector<16x1xbf16>
    tpu.vector_store %arg8[%c0_3, %c192], %3 {strides = array<i32>} : memref<16x193xbf16, #tpu.memory_space<vmem>>, vector<16x1xbf16>,
    %5 = vector.shape_cast %1 : vector<1x16x64xbf16> to vector<16x64xbf16>
    %c0_4 = arith.constant 0 : index
    %c0_5 = arith.constant 0 : index
    %6 = vector.load %arg8[%c0_4, %c0_5] : memref<16x193xbf16, #tpu.memory_space<vmem>>, vector<1x64xbf16>
    tpu.vector_store %arg8[%c0_4, %c0_5], %2 {strides = array<i32>} : memref<16x193xbf16, #tpu.memory_space<vmem>>, vector<1x64xbf16>,
    %7 = vector.extract_strided_slice %5 {offsets = [0, 0], sizes = [15, 64], strides = [1, 1]} : vector<16x64xbf16> to vector<15x64xbf16>
    %c1 = arith.constant 1 : index
    %c0_6 = arith.constant 0 : index
    %8 = vector.load %arg8[%c1, %c0_6] : memref<16x193xbf16, #tpu.memory_space<vmem>>, vector<15x64xbf16>
    tpu.vector_store %arg8[%c1, %c0_6], %7 {strides = array<i32>} : memref<16x193xbf16, #tpu.memory_space<vmem>>, vector<15x64xbf16>,
    %c0_7 = arith.constant 0 : index
    %c64 = arith.constant 64 : index
    %9 = vector.load %arg8[%c0_7, %c64] : memref<16x193xbf16, #tpu.memory_space<vmem>>, vector<16x64xbf16>
    tpu.vector_store %arg8[%c0_7, %c64], %5 {strides = array<i32>} : memref<16x193xbf16, #tpu.memory_space<vmem>>, vector<16x64xbf16>,
    %10 = vector.extract_strided_slice %5 {offsets = [1, 0], sizes = [15, 64], strides = [1, 1]} : vector<16x64xbf16> to vector<15x64xbf16>
    %c0_8 = arith.constant 0 : index
    %c128 = arith.constant 128 : index
    %11 = vector.load %arg8[%c0_8, %c128] : memref<16x193xbf16, #tpu.memory_space<vmem>>, vector<15x64xbf16>
    tpu.vector_store %arg8[%c0_8, %c128], %10 {strides = array<i32>} : memref<16x193xbf16, #tpu.memory_space<vmem>>, vector<15x64xbf16>,
    %c15 = arith.constant 15 : index
    %c128_9 = arith.constant 128 : index
    %12 = vector.load %arg8[%c15, %c128_9] : memref<16x193xbf16, #tpu.memory_space<vmem>>, vector<1x64xbf16>
    tpu.vector_store %arg8[%c15, %c128_9], %2 {strides = array<i32>} : memref<16x193xbf16, #tpu.memory_space<vmem>>, vector<1x64xbf16>,
    %c0_10 = arith.constant 0 : index
    %c0_11 = arith.constant 0 : index
    %13 = vector.load %arg8[%c0_10, %c0_11] : memref<16x193xbf16, #tpu.memory_space<vmem>>, vector<16x193xbf16>
    %c0_12 = arith.constant 0 : index
    %c0_13 = arith.constant 0 : index
    %14 = vector.load %arg2[%c0_12, %c0_13] : memref<193x128xbf16, #tpu.memory_space<vmem>>, vector<193x128xbf16>
    %cst_14 = arith.constant dense<0.000000e+00> : vector<16x128xf32>
    %15 = tpu.matmul %13, %14, %cst_14 {dimension_numbers = #tpu.dot_dimension_numbers<[1], [0], [0], [1], [0, 0, 1, 1], [], []>} : vector<16x193xbf16>, vector<193x128xbf16>, vector<16x128xf32> -> vector<16x128xf32>
    %16 = vector.shape_cast %15 : vector<16x128xf32> to vector<1x16x128xf32>
    %17 = arith.truncf %16 : vector<1x16x128xf32> to vector<1x16x128xbf16>
    %c0_15 = arith.constant 0 : index
    %c0_16 = arith.constant 0 : index
    %c0_17 = arith.constant 0 : index
    %18 = vector.load %arg5[%c0_15, %c0_16, %c0_17] : memref<1x16x128xbf16, #tpu.memory_space<vmem>>, vector<1x16x128xbf16>
    tpu.vector_store %arg5[%c0_15, %c0_16, %c0_17], %17 {strides = array<i32>} : memref<1x16x128xbf16, #tpu.memory_space<vmem>>, vector<1x16x128xbf16>,
    %cst_18 = arith.constant dense<0.000000e+00> : vector<128xf32>
    %19 = vector.multi_reduction <add>, %15, %cst_18 [0] : vector<16x128xf32> to vector<128xf32>
    %20 = vector.shape_cast %19 : vector<128xf32> to vector<1x128xf32>
    %c0_19 = arith.constant 0 : index
    %c0_20 = arith.constant 0 : index
    %c0_21 = arith.constant 0 : index
    %21 = vector.load %arg6[%c0_19, %c0_20, %c0_21] : memref<1x1x128xf32, #tpu.memory_space<vmem>>, vector<1x1x128xf32>
    %22 = vector.shape_cast %21 : vector<1x1x128xf32> to vector<1x128xf32>
    %23 = vector.shape_cast %20 : vector<1x128xf32> to vector<1x1x128xf32>
    tpu.vector_store %arg6[%c0_19, %c0_20, %c0_21], %23 {strides = array<i32>} : memref<1x1x128xf32, #tpu.memory_space<vmem>>, vector<1x1x128xf32>,
    %24 = arith.mulf %15, %15 : vector<16x128xf32>
    %cst_22 = arith.constant dense<0.000000e+00> : vector<128xf32>
    %25 = vector.multi_reduction <add>, %24, %cst_22 [0] : vector<16x128xf32> to vector<128xf32>
    %26 = vector.shape_cast %25 : vector<128xf32> to vector<1x128xf32>
    %c0_23 = arith.constant 0 : index
    %c0_24 = arith.constant 0 : index
    %c0_25 = arith.constant 0 : index
    %27 = vector.load %arg7[%c0_23, %c0_24, %c0_25] : memref<1x1x128xf32, #tpu.memory_space<vmem>>, vector<1x1x128xf32>
    %28 = vector.shape_cast %27 : vector<1x1x128xf32> to vector<1x128xf32>
    %29 = vector.shape_cast %26 : vector<1x128xf32> to vector<1x1x128xf32>
    tpu.vector_store %arg7[%c0_23, %c0_24, %c0_25], %29 {strides = array<i32>} : memref<1x1x128xf32, #tpu.memory_space<vmem>>, vector<1x1x128xf32>,
    return
  }
  func.func @transform_0(%arg0: i32) -> (i32, i32, i32) {
    %c0_i32 = arith.constant 0 : i32
    %c0_i32_0 = arith.constant 0 : i32
    %c0_i32_1 = arith.constant 0 : i32
    return %arg0, %c0_i32, %c0_i32_0 : i32, i32, i32
  }
  func.func @transform_1(%arg0: i32) -> (i32, i32) {
    %c0_i32 = arith.constant 0 : i32
    %c0_i32_0 = arith.constant 0 : i32
    %c0_i32_1 = arith.constant 0 : i32
    return %c0_i32, %c0_i32_0 : i32, i32
  }
  func.func @transform_2(%arg0: i32) -> (i32, i32) {
    %c0_i32 = arith.constant 0 : i32
    %c0_i32_0 = arith.constant 0 : i32
    %c0_i32_1 = arith.constant 0 : i32
    return %c0_i32, %c0_i32_0 : i32, i32
  }
  func.func @transform_3(%arg0: i32) -> (i32, i32) {
    %c0_i32 = arith.constant 0 : i32
    %c0_i32_0 = arith.constant 0 : i32
    %c0_i32_1 = arith.constant 0 : i32
    return %c0_i32, %c0_i32_0 : i32, i32
  }
  func.func @transform_4(%arg0: i32) -> (i32, i32, i32) {
    %c0_i32 = arith.constant 0 : i32
    %c0_i32_0 = arith.constant 0 : i32
    %c0_i32_1 = arith.constant 0 : i32
    return %arg0, %c0_i32, %c0_i32_0 : i32, i32, i32
  }
  func.func @transform_5(%arg0: i32) -> (i32, i32, i32) {
    %c0_i32 = arith.constant 0 : i32
    %c0_i32_0 = arith.constant 0 : i32
    %c0_i32_1 = arith.constant 0 : i32
    return %arg0, %c0_i32, %c0_i32_0 : i32, i32, i32
  }
  func.func @transform_6(%arg0: i32) -> (i32, i32, i32) {
    %c0_i32 = arith.constant 0 : i32
    %c0_i32_0 = arith.constant 0 : i32
    %c0_i32_1 = arith.constant 0 : i32
    return %arg0, %c0_i32, %c0_i32_0 : i32, i32, i32
  }
}

module attributes {stable_mosaic.version = 11 : i64} {
  func.func @_conv3x3_rowmm_kernel(%arg0: i32, %arg1: memref<1x16x128xbf16, #tpu.memory_space<vmem>>, %arg2: memref<385x128xbf16, #tpu.memory_space<vmem>>, %arg3: memref<1x128xf32, #tpu.memory_space<vmem>>, %arg4: memref<1x128xf32, #tpu.memory_space<vmem>>, %arg5: memref<1x16x128xf32, #tpu.memory_space<vmem>>, %arg6: memref<1x1x128xf32, #tpu.memory_space<vmem>>, %arg7: memref<1x1x128xf32, #tpu.memory_space<vmem>>, %arg8: memref<16x385xbf16, #tpu.memory_space<vmem>>) attributes {dimension_semantics = [#tpu.dimension_semantics<parallel>], iteration_bounds = array<i64: 2>, scalar_prefetch = 0 : i64, scratch_operands = 1 : i64, tpu.core_type = #tpu.core_type<tc>, window_params = [{transform_indices = @transform_0, window_bounds = array<i64: 1, 16, 128>}, {pipeline_mode = #tpu.pipeline_mode<synchronous>, transform_indices = @transform_1, window_bounds = array<i64: 385, 128>}, {pipeline_mode = #tpu.pipeline_mode<synchronous>, transform_indices = @transform_2, window_bounds = array<i64: 1, 128>}, {pipeline_mode = #tpu.pipeline_mode<synchronous>, transform_indices = @transform_3, window_bounds = array<i64: 1, 128>}, {transform_indices = @transform_4, window_bounds = array<i64: 1, 16, 128>}, {transform_indices = @transform_5, window_bounds = array<i64: 1, 1, 128>}, {transform_indices = @transform_6, window_bounds = array<i64: 1, 1, 128>}]} {
    %c0 = arith.constant 0 : index
    %c0_0 = arith.constant 0 : index
    %c0_1 = arith.constant 0 : index
    %0 = vector.load %arg1[%c0, %c0_0, %c0_1] : memref<1x16x128xbf16, #tpu.memory_space<vmem>>, vector<1x16x128xbf16>
    %1 = arith.extf %0 : vector<1x16x128xbf16> to vector<1x16x128xf32>
    %c0_2 = arith.constant 0 : index
    %c0_3 = arith.constant 0 : index
    %2 = vector.load %arg3[%c0_2, %c0_3] : memref<1x128xf32, #tpu.memory_space<vmem>>, vector<1x128xf32>
    %3 = vector.shape_cast %2 : vector<1x128xf32> to vector<1x1x128xf32>
    %4 = vector.broadcast %3 : vector<1x1x128xf32> to vector<1x16x128xf32>
    %5 = arith.mulf %1, %4 : vector<1x16x128xf32>
    %c0_4 = arith.constant 0 : index
    %c0_5 = arith.constant 0 : index
    %6 = vector.load %arg4[%c0_4, %c0_5] : memref<1x128xf32, #tpu.memory_space<vmem>>, vector<1x128xf32>
    %7 = vector.shape_cast %6 : vector<1x128xf32> to vector<1x1x128xf32>
    %8 = vector.broadcast %7 : vector<1x1x128xf32> to vector<1x16x128xf32>
    %9 = arith.addf %5, %8 : vector<1x16x128xf32>
    %cst = arith.constant 0.000000e+00 : f32
    %10 = vector.broadcast %cst : f32 to vector<1x16x128xf32>
    %11 = arith.maximumf %9, %10 : vector<1x16x128xf32>
    %12 = arith.truncf %11 : vector<1x16x128xf32> to vector<1x16x128xbf16>
    %cst_6 = arith.constant 0.000000e+00 : bf16
    %13 = vector.broadcast %cst_6 : bf16 to vector<1x128xbf16>
    %cst_7 = arith.constant 1.000000e+00 : bf16
    %14 = vector.broadcast %cst_7 : bf16 to vector<16x1xbf16>
    %c0_8 = arith.constant 0 : index
    %c384 = arith.constant 384 : index
    %15 = vector.load %arg8[%c0_8, %c384] : memref<16x385xbf16, #tpu.memory_space<vmem>>, vector<16x1xbf16>
    tpu.vector_store %arg8[%c0_8, %c384], %14 {strides = array<i32>} : memref<16x385xbf16, #tpu.memory_space<vmem>>, vector<16x1xbf16>,
    %16 = vector.shape_cast %12 : vector<1x16x128xbf16> to vector<16x128xbf16>
    %c0_9 = arith.constant 0 : index
    %c0_10 = arith.constant 0 : index
    %17 = vector.load %arg8[%c0_9, %c0_10] : memref<16x385xbf16, #tpu.memory_space<vmem>>, vector<1x128xbf16>
    tpu.vector_store %arg8[%c0_9, %c0_10], %13 {strides = array<i32>} : memref<16x385xbf16, #tpu.memory_space<vmem>>, vector<1x128xbf16>,
    %18 = vector.extract_strided_slice %16 {offsets = [0, 0], sizes = [15, 128], strides = [1, 1]} : vector<16x128xbf16> to vector<15x128xbf16>
    %c1 = arith.constant 1 : index
    %c0_11 = arith.constant 0 : index
    %19 = vector.load %arg8[%c1, %c0_11] : memref<16x385xbf16, #tpu.memory_space<vmem>>, vector<15x128xbf16>
    tpu.vector_store %arg8[%c1, %c0_11], %18 {strides = array<i32>} : memref<16x385xbf16, #tpu.memory_space<vmem>>, vector<15x128xbf16>,
    %c0_12 = arith.constant 0 : index
    %c128 = arith.constant 128 : index
    %20 = vector.load %arg8[%c0_12, %c128] : memref<16x385xbf16, #tpu.memory_space<vmem>>, vector<16x128xbf16>
    tpu.vector_store %arg8[%c0_12, %c128], %16 {strides = array<i32>} : memref<16x385xbf16, #tpu.memory_space<vmem>>, vector<16x128xbf16>,
    %21 = vector.extract_strided_slice %16 {offsets = [1, 0], sizes = [15, 128], strides = [1, 1]} : vector<16x128xbf16> to vector<15x128xbf16>
    %c0_13 = arith.constant 0 : index
    %c256 = arith.constant 256 : index
    %22 = vector.load %arg8[%c0_13, %c256] : memref<16x385xbf16, #tpu.memory_space<vmem>>, vector<15x128xbf16>
    tpu.vector_store %arg8[%c0_13, %c256], %21 {strides = array<i32>} : memref<16x385xbf16, #tpu.memory_space<vmem>>, vector<15x128xbf16>,
    %c15 = arith.constant 15 : index
    %c256_14 = arith.constant 256 : index
    %23 = vector.load %arg8[%c15, %c256_14] : memref<16x385xbf16, #tpu.memory_space<vmem>>, vector<1x128xbf16>
    tpu.vector_store %arg8[%c15, %c256_14], %13 {strides = array<i32>} : memref<16x385xbf16, #tpu.memory_space<vmem>>, vector<1x128xbf16>,
    %c0_15 = arith.constant 0 : index
    %c0_16 = arith.constant 0 : index
    %24 = vector.load %arg8[%c0_15, %c0_16] : memref<16x385xbf16, #tpu.memory_space<vmem>>, vector<16x385xbf16>
    %c0_17 = arith.constant 0 : index
    %c0_18 = arith.constant 0 : index
    %25 = vector.load %arg2[%c0_17, %c0_18] : memref<385x128xbf16, #tpu.memory_space<vmem>>, vector<385x128xbf16>
    %cst_19 = arith.constant dense<0.000000e+00> : vector<16x128xf32>
    %26 = tpu.matmul %24, %25, %cst_19 {dimension_numbers = #tpu.dot_dimension_numbers<[1], [0], [0], [1], [0, 0, 1, 1], [], []>} : vector<16x385xbf16>, vector<385x128xbf16>, vector<16x128xf32> -> vector<16x128xf32>
    %27 = vector.shape_cast %26 : vector<16x128xf32> to vector<1x16x128xf32>
    %c0_20 = arith.constant 0 : index
    %c0_21 = arith.constant 0 : index
    %c0_22 = arith.constant 0 : index
    %28 = vector.load %arg5[%c0_20, %c0_21, %c0_22] : memref<1x16x128xf32, #tpu.memory_space<vmem>>, vector<1x16x128xf32>
    tpu.vector_store %arg5[%c0_20, %c0_21, %c0_22], %27 {strides = array<i32>} : memref<1x16x128xf32, #tpu.memory_space<vmem>>, vector<1x16x128xf32>,
    %cst_23 = arith.constant dense<0.000000e+00> : vector<128xf32>
    %29 = vector.multi_reduction <add>, %26, %cst_23 [0] : vector<16x128xf32> to vector<128xf32>
    %30 = vector.shape_cast %29 : vector<128xf32> to vector<1x128xf32>
    %c0_24 = arith.constant 0 : index
    %c0_25 = arith.constant 0 : index
    %c0_26 = arith.constant 0 : index
    %31 = vector.load %arg6[%c0_24, %c0_25, %c0_26] : memref<1x1x128xf32, #tpu.memory_space<vmem>>, vector<1x1x128xf32>
    %32 = vector.shape_cast %31 : vector<1x1x128xf32> to vector<1x128xf32>
    %33 = vector.shape_cast %30 : vector<1x128xf32> to vector<1x1x128xf32>
    tpu.vector_store %arg6[%c0_24, %c0_25, %c0_26], %33 {strides = array<i32>} : memref<1x1x128xf32, #tpu.memory_space<vmem>>, vector<1x1x128xf32>,
    %34 = arith.mulf %26, %26 : vector<16x128xf32>
    %cst_27 = arith.constant dense<0.000000e+00> : vector<128xf32>
    %35 = vector.multi_reduction <add>, %34, %cst_27 [0] : vector<16x128xf32> to vector<128xf32>
    %36 = vector.shape_cast %35 : vector<128xf32> to vector<1x128xf32>
    %c0_28 = arith.constant 0 : index
    %c0_29 = arith.constant 0 : index
    %c0_30 = arith.constant 0 : index
    %37 = vector.load %arg7[%c0_28, %c0_29, %c0_30] : memref<1x1x128xf32, #tpu.memory_space<vmem>>, vector<1x1x128xf32>
    %38 = vector.shape_cast %37 : vector<1x1x128xf32> to vector<1x128xf32>
    %39 = vector.shape_cast %36 : vector<1x128xf32> to vector<1x1x128xf32>
    tpu.vector_store %arg7[%c0_28, %c0_29, %c0_30], %39 {strides = array<i32>} : memref<1x1x128xf32, #tpu.memory_space<vmem>>, vector<1x1x128xf32>,
    return
  }
  func.func @transform_0(%arg0: i32) -> (i32, i32, i32) {
    %c0_i32 = arith.constant 0 : i32
    %c0_i32_0 = arith.constant 0 : i32
    %c0_i32_1 = arith.constant 0 : i32
    return %arg0, %c0_i32, %c0_i32_0 : i32, i32, i32
  }
  func.func @transform_1(%arg0: i32) -> (i32, i32) {
    %c0_i32 = arith.constant 0 : i32
    %c0_i32_0 = arith.constant 0 : i32
    %c0_i32_1 = arith.constant 0 : i32
    return %c0_i32, %c0_i32_0 : i32, i32
  }
  func.func @transform_2(%arg0: i32) -> (i32, i32) {
    %c0_i32 = arith.constant 0 : i32
    %c0_i32_0 = arith.constant 0 : i32
    %c0_i32_1 = arith.constant 0 : i32
    return %c0_i32, %c0_i32_0 : i32, i32
  }
  func.func @transform_3(%arg0: i32) -> (i32, i32) {
    %c0_i32 = arith.constant 0 : i32
    %c0_i32_0 = arith.constant 0 : i32
    %c0_i32_1 = arith.constant 0 : i32
    return %c0_i32, %c0_i32_0 : i32, i32
  }
  func.func @transform_4(%arg0: i32) -> (i32, i32, i32) {
    %c0_i32 = arith.constant 0 : i32
    %c0_i32_0 = arith.constant 0 : i32
    %c0_i32_1 = arith.constant 0 : i32
    return %arg0, %c0_i32, %c0_i32_0 : i32, i32, i32
  }
  func.func @transform_5(%arg0: i32) -> (i32, i32, i32) {
    %c0_i32 = arith.constant 0 : i32
    %c0_i32_0 = arith.constant 0 : i32
    %c0_i32_1 = arith.constant 0 : i32
    return %arg0, %c0_i32, %c0_i32_0 : i32, i32, i32
  }
  func.func @transform_6(%arg0: i32) -> (i32, i32, i32) {
    %c0_i32 = arith.constant 0 : i32
    %c0_i32_0 = arith.constant 0 : i32
    %c0_i32_1 = arith.constant 0 : i32
    return %arg0, %c0_i32, %c0_i32_0 : i32, i32, i32
  }
}

</mosaic_0001>

<bundles_post_ra>
// kernel: tile.1
= control target key start
LH: loop header
LB: loop body
LE: loop exit
PB: predicated region body
PF: predicated region fallthrough
CT: control target
= control target key end

     0   :  { %s156_s8 = smov 104   ;;  %vm34_vm0 = vcmask 64512   ;;  %s157_s9 = smov 112   ;;  %vm40_vm1 = vcmask 1048512   ;;  %vm46_vm2 = vcmask 982912   ;;  %vm52_vm3 = vcmask 917312   ;;  %s187_s0 = inlined_call_operand.vmem [shape: bf16[16,8], index: 0, kind: input, shape index: {}]   ;;  %s188_s1 = inlined_call_operand.vmem [shape: bf16[1,128], index: 1, kind: output, shape index: {}]  }
   0x1   :  { %v136_v0 = vld [vmem:[%s187_s0] sm:$0xff]   ;;  %s155_s0 = smov 120   ;;  %s158_s10 = smov 96   ;;  %vm58_vm4 = vcmask 851712   ;;  %vm64_vm5 = vcmask 786112   ;;  %vm70_vm6 = vcmask 720512  }
   0x2   :  { %v138_v1 = vunpack.c.h.bf16 %v136_v0  ;;  %v137_v2 = vunpack.c.l.bf16 %v136_v0  ;;  %s159_s11 = smov 88   ;;  %s160_s12 = smov 80   ;;  %vm76_vm7 = vcmask 654912   ;;  %vm82_vm8 = vcmask 589312  }
   0x3   :  { %s161_s13 = smov 72   ;;  %s162_s14 = smov 64   ;;  %vm88_vm9 = vcmask 523712   ;;  %vm94_vm10 = vcmask 458112   ;;  %vm100_vm11 = vcmask 392512   ;;  %vm106_vm12 = vcmask 326912  }
   0x4   :  { %19 = vst [vmem:[#allocation1 + $0x8] sm:$0xff] %v138_v1  ;;  %32 = vst [vmem:[#allocation1] sm:$0xff] %v137_v2  ;;  %s163_s15 = smov 56   ;;  %s164_s16 = smov 48   ;;  %vm112_vm13 = vcmask 261312   ;;  %vm118_vm14 = vcmask 195712  }
   0x5   :  { %s165_s17 = smov 40   ;;  %s166_s18 = smov 32   ;;  %vm124_vm15 = vcmask 130112   ;;  %v170_v35 = vmov 0.0  }
   0x6   :  { %s167_s19 = smov 24   ;;  %s168_s20 = smov 16  }
   0x7   :  { %s169_s21 = smov 8  }
   0xb   :  { %v37_v3 = vld [vmem:[#allocation1 + $0xf] sm:$0x1]   ;;  %v49_v4 = vld [vmem:[#allocation1 + $0xd] sm:$0x1]   ;;  %v43_v5 = vld [vmem:[#allocation1 + $0xe] sm:$0x1]  }
   0xc   :  { %38 = vrot.lane.b32.xlu0 %v37_v3, %s155_s0  ;;  %50 = vrot.lane.b32.xlu1 %v49_v4, %s156_s8  ;;  %v55_v6 = vld [vmem:[#allocation1 + $0xc] sm:$0x1]   ;;  %v33_v7 = vld [vmem:[#allocation1] sm:$0x1]   ;;  %v61_v8 = vld [vmem:[#allocation1 + $0xb] sm:$0x1]  }
   0xd   :  { %v67_v9 = vld [vmem:[#allocation1 + $0xa] sm:$0x1]   ;;  %35 = vst.msk [vmem:[#allocation0] sm:$0x1] %vm34_vm0, %v33_v7   ;;  %v73_v10 = vld [vmem:[#allocation1 + $0x9] sm:$0x1]  }
   0xe   :  { %v79_v11 = vld [vmem:[#allocation1 + $0x8] sm:$0x1]   ;;  %v85_v12 = vld [vmem:[#allocation1 + $0x7] sm:$0x1]   ;;  %v91_v13 = vld [vmem:[#allocation1 + $0x6] sm:$0x1]  }
   0xf   :  { %v97_v14 = vld [vmem:[#allocation1 + $0x5] sm:$0x1]   ;;  %v103_v15 = vld [vmem:[#allocation1 + $0x4] sm:$0x1]   ;;  %v109_v16 = vld [vmem:[#allocation1 + $0x3] sm:$0x1]  }
  0x10   :  { %44 = vrot.lane.b32.xlu0 %v43_v5, %s157_s9  ;;  %56 = vrot.lane.b32.xlu1 %v55_v6, %s158_s10  ;;  %v115_v17 = vld [vmem:[#allocation1 + $0x2] sm:$0x1]   ;;  %v121_v18 = vld [vmem:[#allocation1 + $0x1] sm:$0x1]  }
  0x14   :  { %62 = vrot.lane.b32.xlu0 %v61_v8, %s159_s11  ;;  %68 = vrot.lane.b32.xlu1 %v67_v9, %s160_s12 }
  0x18   :  { %74 = vrot.lane.b32.xlu0 %v73_v10, %s161_s13  ;;  %80 = vrot.lane.b32.xlu1 %v79_v11, %s162_s14 }
  0x1c   :  { %86 = vrot.lane.b32.xlu0 %v85_v12, %s163_s15  ;;  %92 = vrot.lane.b32.xlu1 %v91_v13, %s164_s16 }
  0x20   :  { %98 = vrot.lane.b32.xlu0 %v97_v14, %s165_s17  ;;  %104 = vrot.lane.b32.xlu1 %v103_v15, %s166_s18 }
  0x24   :  { %110 = vrot.lane.b32.xlu0 %v109_v16, %s167_s19  ;;  %116 = vrot.lane.b32.xlu1 %v115_v17, %s168_s20 }
  0x28   :  { %122 = vrot.lane.b32.xlu0 %v121_v18, %s169_s21 }
  0x7e   :  { %v39_v19 = vpop.permute.xlu0 %38   ;;  %v51_v20 = vpop.permute.xlu1 %50  }
  0x7f   :  { %41 = vst.msk [vmem:[#allocation0] sm:$0x1] %vm40_vm1, %v39_v19  }
  0x82   :  { %v45_v21 = vpop.permute.xlu0 %44   ;;  %v57_v22 = vpop.permute.xlu1 %56  }
  0x83   :  { %47 = vst.msk [vmem:[#allocation0] sm:$0x1] %vm46_vm2, %v45_v21  }
  0x84   :  { %53 = vst.msk [vmem:[#allocation0] sm:$0x1] %vm52_vm3, %v51_v20  }
  0x85   :  { %59 = vst.msk [vmem:[#allocation0] sm:$0x1] %vm58_vm4, %v57_v22  }
  0x86   :  { %v63_v23 = vpop.permute.xlu0 %62   ;;  %v69_v24 = vpop.permute.xlu1 %68  }
  0x87   :  { %65 = vst.msk [vmem:[#allocation0] sm:$0x1] %vm64_vm5, %v63_v23  }
  0x88   :  { %71 = vst.msk [vmem:[#allocation0] sm:$0x1] %vm70_vm6, %v69_v24  }
  0x8a   :  { %v75_v25 = vpop.permute.xlu0 %74   ;;  %v81_v26 = vpop.permute.xlu1 %80  }
  0x8b   :  { %77 = vst.msk [vmem:[#allocation0] sm:$0x1] %vm76_vm7, %v75_v25  }
  0x8c   :  { %83 = vst.msk [vmem:[#allocation0] sm:$0x1] %vm82_vm8, %v81_v26  }
  0x8e   :  { %v87_v27 = vpop.permute.xlu0 %86   ;;  %v93_v28 = vpop.permute.xlu1 %92  }
  0x8f   :  { %89 = vst.msk [vmem:[#allocation0] sm:$0x1] %vm88_vm9, %v87_v27  }
  0x90   :  { %95 = vst.msk [vmem:[#allocation0] sm:$0x1] %vm94_vm10, %v93_v28  }
  0x92   :  { %v99_v29 = vpop.permute.xlu0 %98   ;;  %v105_v30 = vpop.permute.xlu1 %104  }
  0x93   :  { %101 = vst.msk [vmem:[#allocation0] sm:$0x1] %vm100_vm11, %v99_v29  }
  0x94   :  { %107 = vst.msk [vmem:[#allocation0] sm:$0x1] %vm106_vm12, %v105_v30  }
  0x96   :  { %v111_v31 = vpop.permute.xlu0 %110   ;;  %v117_v32 = vpop.permute.xlu1 %116  }
  0x97   :  { %113 = vst.msk [vmem:[#allocation0] sm:$0x1] %vm112_vm13, %v111_v31  }
  0x98   :  { %119 = vst.msk [vmem:[#allocation0] sm:$0x1] %vm118_vm14, %v117_v32  }
  0x9a   :  { %v123_v33 = vpop.permute.xlu0 %122  }
  0x9b   :  { %125 = vst.msk [vmem:[#allocation0] sm:$0x1] %vm124_vm15, %v123_v33  }
  0xa2   :  { %v130_v34 = vld [vmem:[#allocation0] sm:$0x3] }
  0xa3   :  { %v131_v36 = vpack.c.bf16 %v170_v35, %v130_v34 }
  0xa5   :  { %133 = vst [vmem:[%s188_s1] sm:$0x1] %v131_v36 }

// kernel: tile.22
= control target key start
LH: loop header
LB: loop body
LE: loop exit
PB: predicated region body
PF: predicated region fallthrough
CT: control target
= control target key end

     0   :  { %s20_s0 = inlined_call_operand.<no memory space> [shape: f32[], index: 0, kind: input, shape index: {}]   ;;  %s21_s1 = inlined_call_operand.vmem [shape: f32[1,64], index: 1, kind: output, shape index: {}]  }
   0x1   :  { %v2_v0 = vstv %s20_s0 }
   0x2   :  { %3 = vst [vmem:[%s21_s1] sm:$0x1] %v2_v0 }

// kernel: tile.37
= control target key start
LH: loop header
LB: loop body
LE: loop exit
PB: predicated region body
PF: predicated region fallthrough
CT: control target
= control target key end

     0   :  { %s28_s0 = inlined_call_operand.vmem [shape: f32[8], index: 0, kind: input, shape index: {}]   ;;  %s29_s1 = inlined_call_operand.vmem [shape: f32[16,8], index: 1, kind: output, shape index: {}]  }
   0x1   :  { %v4_v0 = vld [vmem:[%s28_s0] ss:$0 sm:$0xff] }
   0x2   :  { %5 = vst [vmem:[%s29_s1] sm:$0xff] %v4_v0  ;;  %8 = vst [vmem:[%s29_s1 + $0x8] sm:$0xff] %v4_v0 }

// kernel: tile.38
= control target key start
LH: loop header
LB: loop body
LE: loop exit
PB: predicated region body
PF: predicated region fallthrough
CT: control target
= control target key end

     0   :  { %s131_s10 = smov 120   ;;  %s132_s11 = smov 104   ;;  %vm3_vm0 = vcmask 64512   ;;  %vm9_vm1 = vcmask 1048512   ;;  %vm15_vm2 = vcmask 982912   ;;  %vm21_vm3 = vcmask 917312   ;;  %s207_s0 = inlined_call_operand.vmem [shape: f32[16,8], index: 0, kind: input, shape index: {}]   ;;  %s208_s1 = inlined_call_operand.vmem [shape: f32[1,128], index: 1, kind: output, shape index: {}]  }
   0x1   :  { %v101_v0 = vld [vmem:[%s207_s0 + $0xf] sm:$0x1]   ;;  %v103_v1 = vld [vmem:[%s207_s0 + $0xd] sm:$0x1]   ;;  %v102_v2 = vld [vmem:[%s207_s0 + $0xe] sm:$0x1]  }
   0x2   :  { %7 = vrot.lane.b32.xlu0 %v101_v0, %s131_s10  ;;  %19 = vrot.lane.b32.xlu1 %v103_v1, %s132_s11  ;;  %v104_v3 = vld [vmem:[%s207_s0 + $0xc] sm:$0x1]   ;;  %s133_s16 = smov 112   ;;  %s134_s17 = smov 96   ;;  %v105_v4 = vld [vmem:[%s207_s0 + $0xb] sm:$0x1]  }
   0x3   :  { %v106_v5 = vld [vmem:[%s207_s0 + $0xa] sm:$0x1]   ;;  %v2_v6 = vld [vmem:[%s207_s0] sm:$0x1]   ;;  %s135_s24 = smov 88   ;;  %s136_s25 = smov 80  }
   0x4   :  { %4 = vst.msk [vmem:[#allocation0] sm:$0x1] %vm3_vm0, %v2_v6   ;;  %v107_v7 = vld [vmem:[%s207_s0 + $0x9] sm:$0x1]   ;;  %v108_v8 = vld [vmem:[%s207_s0 + $0x8] sm:$0x1]  }
   0x5   :  { %s137_s30 = smov 72   ;;  %s138_s2 = smov 64   ;;  %v109_v9 = vld [vmem:[%s207_s0 + $0x7] sm:$0x1]   ;;  %v110_v10 = vld [vmem:[%s207_s0 + $0x6] sm:$0x1]  }
   0x6   :  { %13 = vrot.lane.b32.xlu0 %v102_v2, %s133_s16  ;;  %25 = vrot.lane.b32.xlu1 %v104_v3, %s134_s17  ;;  %s139_s7 = smov 56   ;;  %s140_s8 = smov 48   ;;  %v111_v11 = vld [vmem:[%s207_s0 + $0x5] sm:$0x1]   ;;  %v112_v12 = vld [vmem:[%s207_s0 + $0x4] sm:$0x1]  }
   0x7   :  { %s141_s13 = smov 40   ;;  %s142_s14 = smov 32   ;;  %v113_v13 = vld [vmem:[%s207_s0 + $0x3] sm:$0x1]   ;;  %v114_v14 = vld [vmem:[%s207_s0 + $0x2] sm:$0x1]  }
   0x8   :  { %s143_s19 = smov 24   ;;  %s144_s20 = smov 16   ;;  %v115_v15 = vld [vmem:[%s207_s0 + $0x1] sm:$0x1]   ;;  %vm27_vm4 = vcmask 851712   ;;  %vm33_vm5 = vcmask 786112  }
   0x9   :  { %s145_s0 = smov 8   ;;  %vm39_vm6 = vcmask 720512   ;;  %vm45_vm7 = vcmask 654912   ;;  %vm51_vm8 = vcmask 589312   ;;  %vm57_vm9 = vcmask 523712  }
   0xa   :  { %31 = vrot.lane.b32.xlu0 %v105_v4, %s135_s24  ;;  %37 = vrot.lane.b32.xlu1 %v106_v5, %s136_s25  ;;  %vm63_vm10 = vcmask 458112   ;;  %vm69_vm11 = vcmask 392512   ;;  %vm75_vm12 = vcmask 326912   ;;  %vm81_vm13 = vcmask 261312  }
   0xb   :  { %vm87_vm14 = vcmask 195712   ;;  %vm93_vm15 = vcmask 130112  }
   0xe   :  { %43 = vrot.lane.b32.xlu0 %v107_v7, %s137_s30  ;;  %49 = vrot.lane.b32.xlu1 %v108_v8, %s138_s2 }
  0x12   :  { %55 = vrot.lane.b32.xlu0 %v109_v9, %s139_s7  ;;  %61 = vrot.lane.b32.xlu1 %v110_v10, %s140_s8 }
  0x16   :  { %67 = vrot.lane.b32.xlu0 %v111_v11, %s141_s13  ;;  %73 = vrot.lane.b32.xlu1 %v112_v12, %s142_s14 }
  0x1a   :  { %79 = vrot.lane.b32.xlu0 %v113_v13, %s143_s19  ;;  %85 = vrot.lane.b32.xlu1 %v114_v14, %s144_s20 }
  0x1e   :  { %91 = vrot.lane.b32.xlu0 %v115_v15, %s145_s0 }
  0x74   :  { %v8_v16 = vpop.permute.xlu0 %7   ;;  %v20_v17 = vpop.permute.xlu1 %19  }
  0x75   :  { %10 = vst.msk [vmem:[#allocation0] sm:$0x1] %vm9_vm1, %v8_v16  }
  0x78   :  { %v14_v18 = vpop.permute.xlu0 %13   ;;  %v26_v19 = vpop.permute.xlu1 %25  }
  0x79   :  { %16 = vst.msk [vmem:[#allocation0] sm:$0x1] %vm15_vm2, %v14_v18  }
  0x7a   :  { %22 = vst.msk [vmem:[#allocation0] sm:$0x1] %vm21_vm3, %v20_v17  }
  0x7b   :  { %28 = vst.msk [vmem:[#allocation0] sm:$0x1] %vm27_vm4, %v26_v19  }
  0x7c   :  { %v32_v20 = vpop.permute.xlu0 %31   ;;  %v38_v21 = vpop.permute.xlu1 %37  }
  0x7d   :  { %34 = vst.msk [vmem:[#allocation0] sm:$0x1] %vm33_vm5, %v32_v20  }
  0x7e   :  { %40 = vst.msk [vmem:[#allocation0] sm:$0x1] %vm39_vm6, %v38_v21  }
  0x80   :  { %v44_v22 = vpop.permute.xlu0 %43   ;;  %v50_v23 = vpop.permute.xlu1 %49  }
  0x81   :  { %46 = vst.msk [vmem:[#allocation0] sm:$0x1] %vm45_vm7, %v44_v22  }
  0x82   :  { %52 = vst.msk [vmem:[#allocation0] sm:$0x1] %vm51_vm8, %v50_v23  }
  0x84   :  { %v56_v24 = vpop.permute.xlu0 %55   ;;  %v62_v25 = vpop.permute.xlu1 %61  }
  0x85   :  { %58 = vst.msk [vmem:[#allocation0] sm:$0x1] %vm57_vm9, %v56_v24  }
  0x86   :  { %64 = vst.msk [vmem:[#allocation0] sm:$0x1] %vm63_vm10, %v62_v25  }
  0x88   :  { %v68_v26 = vpop.permute.xlu0 %67   ;;  %v74_v27 = vpop.permute.xlu1 %73  }
  0x89   :  { %70 = vst.msk [vmem:[#allocation0] sm:$0x1] %vm69_vm11, %v68_v26  }
  0x8a   :  { %76 = vst.msk [vmem:[#allocation0] sm:$0x1] %vm75_vm12, %v74_v27  }
  0x8c   :  { %v80_v28 = vpop.permute.xlu0 %79   ;;  %v86_v29 = vpop.permute.xlu1 %85  }
  0x8d   :  { %82 = vst.msk [vmem:[#allocation0] sm:$0x1] %vm81_vm13, %v80_v28  }
  0x8e   :  { %88 = vst.msk [vmem:[#allocation0] sm:$0x1] %vm87_vm14, %v86_v29  }
  0x90   :  { %v92_v30 = vpop.permute.xlu0 %91  }
  0x91   :  { %94 = vst.msk [vmem:[#allocation0] sm:$0x1] %vm93_vm15, %v92_v30  }
  0x98   :  { %v98_v31 = vld [vmem:[#allocation0] sm:$0x1] }
  0x99   :  { %100 = vst [vmem:[%s208_s1] sm:$0x1] %v98_v31 }

// kernel: conv_block_forward.2
= control target key start
LH: loop header
LB: loop body
LE: loop exit
PB: predicated region body
PF: predicated region fallthrough
CT: control target
= control target key end

     0   :  { %s708_s21 = smov 0   ;;  %s792_s0 = inlined_call_operand.vmem [shape: f32[2,16,64], index: 0, kind: input, shape index: {}]   ;;  %s793_s1 = inlined_call_operand.vmem [shape: bf16[193,128], index: 1, kind: input, shape index: {}]   ;;  %s794_s2 = inlined_call_operand.vmem [shape: f32[1,64], index: 2, kind: input, shape index: {}]   ;;  %s795_s3 = inlined_call_operand.vmem [shape: f32[1,64], index: 3, kind: input, shape index: {}]   ;;  %s796_s4 = inlined_call_operand.vmem [shape: bf16[2,16,128], index: 4, kind: output, shape index: {0}]   ;;  %s797_s5 = inlined_call_operand.vmem [shape: f32[2,1,128], index: 5, kind: output, shape index: {1}]   ;;  %s798_s6 = inlined_call_operand.vmem [shape: f32[2,1,128], index: 6, kind: output, shape index: {2}]  }
   0x1 LB: > { %s602_s2 = sadd.s32 4294967295, %s668_s21   ;;  %p606_p0 = scmp.ge.s32.totalorder %s668_s21, 1  ;;  %s668_s21 = sphi %s708_s21, %s17_s21  }
   0x2   : > { %p217_p1 = scmp.lt.s32.totalorder %s668_s21, 3 }
   0x4   : > { %p218_p2 = pnand %p606_p0, %p217_p1 }
   0x5   : > { %p253_p3 = scmp.lt.s32.totalorder (!%p218_p2), %s602_s2, 1  ;;  %v649_v0 = vld [vmem:[%s793_s1] sm:$0xff] (!%p218_p2)   ;;  %v670_v1 = vmov (!%p218_p2), 0   ;;  %v650_v2 = vld [vmem:[%s793_s1 + $0x8] sm:$0xff] (!%p218_p2)   ;;  %vm274_vm0 = vcmask (!%p218_p2), 531968   ;;  %v651_v5 = vld [vmem:[%s793_s1 + $0x10] sm:$0xff] (!%p218_p2)  }
   0x6   : > { %221 = sbr.rel (%p218_p2) target bundleno = 373 (0x175), region = 36  ;;  %428 = vmatprep.subr.bf16.mxu0 (!%p218_p2), %v670_v1  ;;  %v671_v7 = vmov (!%p218_p2), 1065369472   ;;  %s672_s7 = smov (!%p218_p2), 64   ;;  %v652_v10 = vld [vmem:[%s793_s1 + $0x18] sm:$0xff] (!%p218_p2)   ;;  %vm276_vm1 = vcmask (!%p218_p2), 516096  }
   0x7   : > { %429 = vmatpush1.bf16.msra.mxu0 (!%p218_p2), %v649_v0  ;;  %275 = vst.msk [vmem:[#allocation2 + $0x8] sm:$0xff] (!%p218_p2), %vm274_vm0, %v671_v7  ;;  %vm290_vm2 = vcmask (!%p218_p2), 523264   ;;  %vm277_vm3 = vsmask.f32 (!%p218_p2), 256  ;;  %v279_v12 = vld [vmem:[#allocation2] sm:$0x1] (!%p218_p2) }
   0x8   : > { %430 = vmatprep.subr.bf16.mxu0 (!%p218_p2), %v670_v1  ;;  %vm278_vm4 = vmand (!%p218_p2), %vm276_vm1, %vm277_vm3  ;;  %vm305_vm5 = vsmask.f32 (!%p218_p2), 7424  ;;  %v653_v14 = vld [vmem:[%s793_s1 + $0x20] sm:$0xff] (!%p218_p2)   ;;  %vm291_vm7 = vsmask.f32 (!%p218_p2), 7938  ;;  %v654_v19 = vld [vmem:[%s793_s1 + $0x28] sm:$0xff] (!%p218_p2)  }
   0x9   : > { %v280_v15 = vsel (!%p218_p2), %vm278_vm4, 0, %v279_v12  ;;  %vm306_vm6 = vmand (!%p218_p2), %vm290_vm2, %vm305_vm5  ;;  %vm310_vm8 = vcmask (!%p218_p2), 523271   ;;  %vm311_vm9 = vsmask.f32 (!%p218_p2), 7966  ;;  %v655_v21 = vld [vmem:[%s793_s1 + $0x30] sm:$0xff] (!%p218_p2)   ;;  %v656_v26 = vld [vmem:[%s793_s1 + $0x38] sm:$0xff] (!%p218_p2)  }
   0xa   : > { %281 = vst [vmem:[#allocation2] sm:$0x1] (!%p218_p2), %v280_v15  ;;  %vm292_vm10 = vmand (!%p218_p2), %vm290_vm2, %vm291_vm7  ;;  %v657_v27 = vld [vmem:[%s793_s1 + $0x40] sm:$0xff] (!%p218_p2)   ;;  %vm418_vm12 = vcmask (!%p218_p2), 531456   ;;  %v658_v29 = vld [vmem:[%s793_s1 + $0x48] sm:$0xff] (!%p218_p2)   ;;  %vm422_vm13 = vcmask (!%p218_p2), 1040384  }
   0xb   : > { %431 = vmatpush1.bf16.msra.mxu0 (!%p218_p2), %v650_v2  ;;  %vm312_vm11 = vmand (!%p218_p2), %vm310_vm8, %vm311_vm9  ;;  %v659_v30 = vld [vmem:[%s793_s1 + $0x50] sm:$0xff] (!%p218_p2)   ;;  %v660_v31 = vld [vmem:[%s793_s1 + $0x58] sm:$0xff] (!%p218_p2)   ;;  %v424_v33 = vsel (!%p218_p2), %vm422_vm13, 65535, %v670_v1  ;;  %vm300_vm14 = vcmask (!%p218_p2), 1048064  }
   0xc   : > { %432 = vmatprep.subr.bf16.mxu0 (!%p218_p2), %v670_v1  ;;  %v661_v32 = vld [vmem:[%s793_s1 + $0x60] ss:$0 sps:$4 sm:$0x11] (!%p218_p2)  }
   0xd   : > { %s800_s2 = smov (!%p253_p3, %s602_s2), 1  ;;  %v426_v34 = vand.u32 %v661_v32, %v424_v33 }
   0xe   : > { %s629_s25 = sshll.u32 %s800_s2, 4  ;;  %v307_v16 = vld [vmem:[#allocation2 + $0x8] sm:$0xff]  ;;  %s265_s10 = scalar_lea.vmem %s797_s5, %s800_s2 }
   0xf   : > { %s257_s28 = scalar_lea.vmem %s792_s0, %s629_s25  ;;  %433 = vmatpush1.bf16.msra.mxu0 %v651_v5  ;;  %s268_s13 = scalar_lea.vmem %s798_s6, %s800_s2 }
  0x10   : > { %v271_v3 = vld [vmem:[%s257_s28] sm:$0xff]  ;;  %v272_v4 = vld [vmem:[%s257_s28 + $0x8] sm:$0xff]  ;;  %434 = vmatprep.subr.bf16.mxu0 %v670_v1  ;;  %s630_s28 = sshll.u32 %s800_s2, 3 }
  0x11   : > { %v273_v6 = vpack.c.bf16 %v272_v4, %v271_v3  ;;  %v293_v22 = vld [vmem:[#allocation2] sm:$0xff] }
  0x13   : > { %v283_v8 = vshrl.u32 %v273_v6, 16  ;;  %v286_v9 = vshll.u32 %v273_v6, 16  ;;  %297 = vrot.lane.b32.xlu0 %v273_v6, %s672_s7  ;;  %435 = vmatpush1.bf16.msra.mxu0 %v652_v10  ;;  %s262_s7 = scalar_lea.vmem %s796_s4, %s630_s28 }
  0x14   : > { %436 = vmatprep.subr.bf16.mxu0 %v670_v1 }
  0x15   : > { %v302_v11 = vrot.slane %v286_v9, 1  ;;  %v285_v17 = vrot.slane %v283_v8, 7 }
  0x17   : > { %v303_v13 = vor.u32 %v302_v11, %v283_v8  ;;  %437 = vmatpush1.bf16.msra.mxu0 %v653_v14  ;;  %v288_v20 = vor.u32 %v286_v9, %v285_v17 }
  0x18   : > { %438 = vmatprep.subr.bf16.mxu0 %v670_v1 }
  0x19   : > { %v308_v18 = vsel %vm306_vm6, %v303_v13, %v307_v16  ;;  %v294_v23 = vsel %vm292_vm10, %v288_v20, %v293_v22 }
  0x1a   : > { %309 = vst [vmem:[#allocation2 + $0x8] sm:$0xff] %v308_v18  ;;  %295 = vst [vmem:[#allocation2] sm:$0xff] %v294_v23 }
  0x1b   : > { %439 = vmatpush1.bf16.msra.mxu0 %v654_v19 }
  0x1c   : > { %440 = vmatprep.subr.bf16.mxu0 %v670_v1 }
  0x1f   : > { %441 = vmatpush1.bf16.msra.mxu0 %v655_v21 }
  0x20   : > { %442 = vmatprep.subr.bf16.mxu0 %v670_v1 }
  0x21   : > { %v313_v24 = vld [vmem:[#allocation2 + $0x8] sm:$0x80] }
  0x22   : > { %v314_v25 = vsel %vm312_vm11, 0, %v313_v24 }
  0x23   : > { %315 = vst [vmem:[#allocation2 + $0x8] sm:$0x80] %v314_v25  ;;  %443 = vmatpush1.bf16.msra.mxu0 %v656_v26 }
  0x24   : > { %444 = vmatprep.subr.bf16.mxu0 %v670_v1 }
  0x27   : > { %445 = vmatpush1.bf16.msra.mxu0 %v657_v27 }
  0x28   : > { %446 = vmatprep.subr.bf16.mxu0 %v670_v1 }
  0x2a   : > { %v317_v28 = vld [vmem:[#allocation2 + $0x8] sm:$0xff] }
  0x2b   : > { %624 = vmatprep.mubr.msk.bf16.mxu0 %vm418_vm12, %v317_v28  ;;  %447 = vmatpush1.bf16.msra.mxu0 %v658_v29 }
  0x2c   : > { %448 = vmatprep.subr.bf16.mxu0 %v670_v1 }
  0x2f   : > { %449 = vmatpush1.bf16.msra.mxu0 %v659_v30 }
  0x30   : > { %450 = vmatprep.subr.bf16.mxu0 %v670_v1 }
  0x33   : > { %451 = vmatpush1.bf16.msra.mxu0 %v660_v31 }
  0x34   : > { %452 = vmatprep.subr.bf16.mxu0 %v670_v1 }
  0x37   : > { %453 = vmatpush1.bf16.msra.mxu0 %v426_v34 }
  0x85   : > { %v298_v35 = vpop.permute.xlu0 %297 }
  0x86   : > { %301 = vst.msk [vmem:[#allocation2] sm:$0xff] %vm300_vm14, %v298_v35 }
  0x8d   : > { %v316_v36 = vld [vmem:[#allocation2] sm:$0xff] }
  0x8e   : > { %461 = vmatmul.mubr.bf16.vlgmr.msra.gmra.mrb[0].mxu0 %v316_v36 }
 0x161   : > { %v462_v37 = vpop.f32.mrb[0].mxu0 }
 0x162   : > { %v464_v38 = vpop.f32.mrb[1].mxu0  ;;  %v487_v40 = vmul.f32 %v462_v37, %v462_v37 }
 0x163   : > { %v465_v39 = vpop.f32.mrb[2].mxu0 }
 0x164   : > { %v636_v41 = vpack.c.bf16 %v465_v39, %v462_v37  ;;  %v479_v42 = vadd.f32 %v465_v39, %v462_v37  ;;  %v488_v43 = vmul.f32 %v465_v39, %v465_v39  ;;  %v467_v44 = vpop.f32.mrb[3].mxu0 }
 0x166   : > { %637 = vst [vmem:[%s262_s7] sm:$0xff] %v636_v41   ;;  %v480_v45 = vrot.slane %v479_v42, 4  ;;  %v489_v46 = vadd.f32 %v488_v43, %v487_v40 }
 0x168   : > { %v481_v47 = vadd.f32 %v480_v45, %v479_v42  ;;  %v490_v48 = vrot.slane %v489_v46, 4 }
 0x16a   : > { %v482_v49 = vrot.slane %v481_v47, 2  ;;  %v491_v50 = vadd.f32 %v490_v48, %v489_v46 }
 0x16c   : > { %v483_v51 = vadd.f32 %v482_v49, %v481_v47  ;;  %v492_v52 = vrot.slane %v491_v50, 2 }
 0x16e   : > { %v484_v53 = vrot.slane %v483_v51, 1  ;;  %v493_v54 = vadd.f32 %v492_v52, %v491_v50 }
 0x170   : > { %v485_v55 = vadd.f32 %v484_v53, %v483_v51  ;;  %v494_v56 = vrot.slane %v493_v54, 1 }
 0x172   : > { %486 = vst [vmem:[%s265_s10] sm:$0x1] %v485_v55  ;;  %v495_v57 = vadd.f32 %v494_v56, %v493_v54 }
 0x174   : > { %496 = vst [vmem:[%s268_s13] sm:$0x1] %v495_v57 }
 0x175 PF: > { %s17_s21 = sadd.s32 1, %s668_s21  }
 0x176   : > { %p14_p4 = scmp.ge.s32.totalorder %s17_s21, 4  }
 0x178   :  { %16 = sbr.rel (!%p14_p4) target bundleno = 1 (0x1), region = 90 }

// kernel: conv_block_forward.3
= control target key start
LH: loop header
LB: loop body
LE: loop exit
PB: predicated region body
PF: predicated region fallthrough
CT: control target
= control target key end

     0   :  { %s896_s21 = smov 0   ;;  %s1024_s0 = inlined_call_operand.vmem [shape: bf16[2,16,128], index: 0, kind: input, shape index: {}]   ;;  %s1025_s1 = inlined_call_operand.vmem [shape: bf16[385,128], index: 1, kind: input, shape index: {}]   ;;  %s1026_s2 = inlined_call_operand.vmem [shape: f32[1,128], index: 2, kind: input, shape index: {}]   ;;  %s1027_s3 = inlined_call_operand.vmem [shape: f32[1,128], index: 3, kind: input, shape index: {}]   ;;  %s1028_s4 = inlined_call_operand.vmem [shape: f32[2,16,128], index: 4, kind: output, shape index: {0}]   ;;  %s1029_s5 = inlined_call_operand.vmem [shape: f32[2,1,128], index: 5, kind: output, shape index: {1}]   ;;  %s1030_s6 = inlined_call_operand.vmem [shape: f32[2,1,128], index: 6, kind: output, shape index: {2}]  }
   0x1 LB: > { %s749_s22 = sadd.s32 4294967295, %s857_s21   ;;  %p753_p0 = scmp.ge.s32.totalorder %s857_s21, 1  ;;  %s857_s21 = sphi %s896_s21, %s17_s21  }
   0x2   : > { %p217_p1 = scmp.lt.s32.totalorder %s857_s21, 3 }
   0x4   : > { %p218_p2 = pnand %p753_p0, %p217_p1 }
   0x5   : > { %v826_v0 = vld [vmem:[%s1025_s1 + $0x40] sm:$0xff] (!%p218_p2)   ;;  %v859_v2 = vmov (!%p218_p2), 0   ;;  %v829_v4 = vld [vmem:[%s1025_s1 + $0x48] sm:$0xff] (!%p218_p2)   ;;  %v832_v7 = vld [vmem:[%s1025_s1 + $0x50] sm:$0xff] (!%p218_p2)   ;;  %p253_p3 = scmp.lt.s32.totalorder (!%p218_p2), %s749_s22, 1  ;;  %vm298_vm0 = vcmask (!%p218_p2), 1040384  }
   0x6   : > { %221 = sbr.rel (%p218_p2) target bundleno = 284 (0x11c), region = 36  ;;  %v827_v1 = vld [vmem:[%s1025_s1] sm:$0xff] (!%p218_p2)   ;;  %583 = vmatprep.subr.bf16.mxu1 (!%p218_p2), %v859_v2  ;;  %794 = vmatprep.subr.bf16.mxu0 (!%p218_p2), %v826_v0  ;;  %v830_v5 = vld [vmem:[%s1025_s1 + $0x8] sm:$0xff] (!%p218_p2)   ;;  %v833_v8 = vld [vmem:[%s1025_s1 + $0x10] sm:$0xff] (!%p218_p2)   ;;  %vm296_vm1 = vcmask (!%p218_p2), 7168   ;;  %v538_v38 = vsel (!%p218_p2), %vm298_vm0, 65535, %v859_v2 }
   0x7   : > { %v828_v3 = vld [vmem:[%s1025_s1 + $0x80] sm:$0xff] (!%p218_p2)   ;;  %795 = vmatpush3.bf16.msra.mxu0 (!%p218_p2), %v827_v1  ;;  %v831_v6 = vld [vmem:[%s1025_s1 + $0x88] sm:$0xff] (!%p218_p2)   ;;  %v834_v9 = vld [vmem:[%s1025_s1 + $0x90] sm:$0xff] (!%p218_p2)   ;;  %vm299_vm2 = vsmask.f32 (!%p218_p2), 256  ;;  %vm312_vm5 = vcmask (!%p218_p2), 1047552  }
   0x8   : > { %584 = vmatpush1.bf16.msra.mxu1 (!%p218_p2), %v828_v3  ;;  %796 = vmatprep.subr.bf16.mxu0 (!%p218_p2), %v829_v4  ;;  %v835_v10 = vld [vmem:[%s1025_s1 + $0x58] sm:$0xff] (!%p218_p2)   ;;  %v838_v13 = vld [vmem:[%s1025_s1 + $0x60] sm:$0xff] (!%p218_p2)   ;;  %v841_v16 = vld [vmem:[%s1025_s1 + $0x68] sm:$0xff] (!%p218_p2)   ;;  %v860_v37 = vmov (!%p218_p2), 1065369472   ;;  %vm327_vm9 = vcmask (!%p218_p2), 1047559  }
   0x9   : > { %585 = vmatprep.subr.bf16.mxu1 (!%p218_p2), %v859_v2  ;;  %v836_v11 = vld [vmem:[%s1025_s1 + $0x18] sm:$0xff] (!%p218_p2)   ;;  %v839_v14 = vld [vmem:[%s1025_s1 + $0x20] sm:$0xff] (!%p218_p2)   ;;  %v842_v17 = vld [vmem:[%s1025_s1 + $0x28] sm:$0xff] (!%p218_p2)   ;;  %297 = vst.msk [vmem:[#allocation2 + $0x18] sm:$0xff] (!%p218_p2), %vm296_vm1, %v860_v37  ;;  %vm313_vm4 = vsmask.f32 (!%p218_p2), 7938 }
   0xa   : > { %v837_v12 = vld [vmem:[%s1025_s1 + $0x98] sm:$0xff] (!%p218_p2)   ;;  %v840_v15 = vld [vmem:[%s1025_s1 + $0xa0] sm:$0xff] (!%p218_p2)   ;;  %v843_v18 = vld [vmem:[%s1025_s1 + $0xa8] sm:$0xff] (!%p218_p2)   ;;  %vm322_vm6 = vsmask.f32 (!%p218_p2), 7424 }
   0xb   : > { %797 = vmatpush3.bf16.msra.mxu0 (!%p218_p2), %v830_v5  ;;  %v844_v19 = vld [vmem:[%s1025_s1 + $0x70] sm:$0xff] (!%p218_p2)   ;;  %v758_v23 = vld [vmem:[%s1026_s2] ss:$0 sm:$0xff] (!%p218_p2)  ;;  %v847_v24 = vld [vmem:[%s1025_s1 + $0x78] sm:$0xff] (!%p218_p2)   ;;  %vm328_vm10 = vsmask.f32 (!%p218_p2), 7966 }
   0xc   : > { %586 = vmatpush1.bf16.msra.mxu1 (!%p218_p2), %v831_v6  ;;  %798 = vmatprep.subr.bf16.mxu0 (!%p218_p2), %v832_v7  ;;  %v845_v20 = vld [vmem:[%s1025_s1 + $0x30] sm:$0xff] (!%p218_p2)   ;;  %v759_v27 = vld [vmem:[%s1027_s3] ss:$0 sm:$0xff] (!%p218_p2)  ;;  %vm300_vm3 = vmand (!%p218_p2), %vm298_vm0, %vm299_vm2 }
   0xd   : > { %587 = vmatprep.subr.bf16.mxu1 %v859_v2  ;;  %s1032_s22 = smov (!%p253_p3, %s749_s22), 1  ;;  %v846_v21 = vld [vmem:[%s1025_s1 + $0xb0] sm:$0xff]   ;;  %v301_v28 = vld [vmem:[#allocation2] sm:$0x1]  ;;  %v848_v31 = vld [vmem:[%s1025_s1 + $0x38] sm:$0xff]  }
   0xe   : > { %s788_s9 = sshll.u32 %s1032_s22, 3  ;;  %v302_v32 = vsel %vm300_vm3, 0, %v301_v28  ;;  %v849_v35 = vld [vmem:[%s1025_s1 + $0xb8] sm:$0xff]   ;;  %v850_v36 = vld [vmem:[%s1025_s1 + $0xc0] ss:$0 sps:$4 sm:$0x11]   ;;  %vm314_vm7 = vmand %vm312_vm5, %vm313_vm4  ;;  %s265_s19 = scalar_lea.vmem %s1029_s5, %s1032_s22 }
   0xf   : > { %799 = vmatpush3.bf16.msra.mxu0 %v833_v8  ;;  %s257_s18 = scalar_lea.vmem %s1024_s0, %s788_s9  ;;  %303 = vst [vmem:[#allocation2] sm:$0x1] %v302_v32  ;;  %v540_v42 = vand.u32 %v850_v36, %v538_v38  ;;  %vm323_vm8 = vmand %vm312_vm5, %vm322_vm6  ;;  %v324_v49 = vld [vmem:[#allocation2 + $0x10] sm:$0xff]  ;;  %s789_s13 = sshll.u32 %s1032_s22, 4 }
  0x10   : > { %588 = vmatpush1.bf16.msra.mxu1 %v834_v9  ;;  %800 = vmatprep.subr.bf16.mxu0 %v835_v10  ;;  %v791_v22 = vld [vmem:[%s257_s18] sm:$0xff]   ;;  %v336_v45 = vld [vmem:[#allocation2 + $0x18] sm:$0xff]  ;;  %vm329_vm11 = vmand %vm327_vm9, %vm328_vm10  ;;  %s262_s16 = scalar_lea.vmem %s1028_s4, %s789_s13  ;;  %s268_s24 = scalar_lea.vmem %s1030_s6, %s1032_s22 }
  0x11   : > { %589 = vmatprep.subr.bf16.mxu1 %v859_v2  ;;  %v792_v25 = vunpack.c.l.bf16 %v791_v22  ;;  %v793_v26 = vunpack.c.h.bf16 %v791_v22  ;;  %785 = vmatprep.mubr.msk.bf16.mxu1 %vm296_vm1, %v336_v45 }
  0x13   : > { %801 = vmatpush3.bf16.msra.mxu0 %v836_v11  ;;  %v282_v29 = vmul.f32 %v792_v25, %v758_v23  ;;  %v283_v30 = vmul.f32 %v793_v26, %v758_v23 }
  0x14   : > { %590 = vmatpush1.bf16.msra.mxu1 %v837_v12  ;;  %802 = vmatprep.subr.bf16.mxu0 %v838_v13 }
  0x15   : > { %591 = vmatprep.subr.bf16.mxu1 %v859_v2  ;;  %v291_v33 = vadd.f32 %v759_v27, %v282_v29  ;;  %v292_v34 = vadd.f32 %v759_v27, %v283_v30 }
  0x16   : > { %v315_v48 = vld [vmem:[#allocation2] sm:$0xff] }
  0x17   : > { %803 = vmatpush3.bf16.msra.mxu0 %v839_v14  ;;  %v293_v39 = vmax.f32 %v291_v33, 0.0  ;;  %v294_v40 = vmax.f32 %v292_v34, 0.0 }
  0x18   : > { %592 = vmatpush1.bf16.msra.mxu1 %v840_v15  ;;  %804 = vmatprep.subr.bf16.mxu0 %v841_v16 }
  0x19   : > { %593 = vmatprep.subr.bf16.mxu1 %v859_v2  ;;  %v295_v41 = vpack.c.bf16 %v294_v40, %v293_v39 }
  0x1b   : > { %805 = vmatpush3.bf16.msra.mxu0 %v842_v17  ;;  %v305_v43 = vshrl.u32 %v295_v41, 16  ;;  %v308_v44 = vshll.u32 %v295_v41, 16  ;;  %574 = vmatprep.mubr.bf16.mxu0 %v295_v41 }
  0x1c   : > { %594 = vmatpush1.bf16.msra.mxu1 %v843_v18  ;;  %806 = vmatprep.subr.bf16.mxu0 %v844_v19 }
  0x1d   : > { %595 = vmatprep.subr.bf16.mxu1 %v859_v2  ;;  %v307_v46 = vrot.slane %v305_v43, 7  ;;  %v319_v47 = vrot.slane %v308_v44, 1 }
  0x1f   : > { %807 = vmatpush3.bf16.msra.mxu0 %v845_v20  ;;  %v310_v50 = vor.u32 %v308_v44, %v307_v46  ;;  %v320_v51 = vor.u32 %v319_v47, %v305_v43 }
  0x20   : > { %596 = vmatpush1.bf16.msra.mxu1 %v846_v21  ;;  %808 = vmatprep.subr.bf16.mxu0 %v847_v24 }
  0x21   : > { %597 = vmatprep.subr.bf16.mxu1 %v859_v2  ;;  %v316_v52 = vsel %vm314_vm7, %v310_v50, %v315_v48  ;;  %v325_v53 = vsel %vm323_vm8, %v320_v51, %v324_v49 }
  0x22   : > { %317 = vst [vmem:[#allocation2] sm:$0xff] %v316_v52  ;;  %326 = vst [vmem:[#allocation2 + $0x10] sm:$0xff] %v325_v53 }
  0x23   : > { %809 = vmatpush3.bf16.msra.mxu0 %v848_v31 }
  0x24   : > { %598 = vmatpush1.bf16.msra.mxu1 %v849_v35 }
  0x25   : > { %599 = vmatprep.subr.bf16.mxu1 %v859_v2 }
  0x26   : > { %575 = vmatmul.mubr.bf16.vlgmr.msra.gmra.mrb[0].mxu0 %v316_v52 }
  0x28   : > { %600 = vmatpush1.bf16.msra.mxu1 %v540_v42 }
  0x29   : > { %v330_v54 = vld [vmem:[#allocation2 + $0x10] sm:$0x80] }
  0x2a   : > { %v331_v55 = vsel %vm329_vm11, 0, %v330_v54 }
  0x2b   : > { %332 = vst [vmem:[#allocation2 + $0x10] sm:$0x80] %v331_v55 }
  0x32   : > { %v335_v56 = vld [vmem:[#allocation2 + $0x10] sm:$0xff] }
  0x33   : > { %616 = vmatmul.mubr.bf16.vlgmr.msra.gmra.mrb[0].mxu1 %v335_v56 }
  0xf9   : > { %v810_v57 = vpop.f32.mrb[0].mxu0 }
  0xfa   : > { %v811_v58 = vpop.f32.mrb[1].mxu0 }
  0xfb   : > { %v812_v59 = vadd.f32 %v811_v58, %v810_v57  ;;  %v813_v60 = vpop.f32.mrb[2].mxu0 }
  0xfc   : > { %v814_v61 = vpop.f32.mrb[3].mxu0 }
  0xfd   : > { %v815_v62 = vadd.f32 %v814_v61, %v813_v60 }
 0x106   : > { %v617_v63 = vpop.f32.mrb[0].mxu1 }
 0x107   : > { %v618_v0 = vadd.f32 %v812_v59, %v617_v63  ;;  %v619_v1 = vpop.f32.mrb[1].mxu1 }
 0x108   : > { %v620_v2 = vpop.f32.mrb[2].mxu1 }
 0x109   : > { %624 = vst [vmem:[%s262_s16] sm:$0xff] %v618_v0  ;;  %v621_v3 = vadd.f32 %v815_v62, %v620_v2  ;;  %v622_v4 = vpop.f32.mrb[3].mxu1  ;;  %v634_v5 = vmul.f32 %v618_v0, %v618_v0 }
 0x10b   : > { %625 = vst [vmem:[%s262_s16 + $0x8] sm:$0xff] %v621_v3  ;;  %v626_v6 = vadd.f32 %v621_v3, %v618_v0  ;;  %v635_v7 = vmul.f32 %v621_v3, %v621_v3 }
 0x10d   : > { %v627_v8 = vrot.slane %v626_v6, 4  ;;  %v636_v9 = vadd.f32 %v635_v7, %v634_v5 }
 0x10f   : > { %v628_v10 = vadd.f32 %v627_v8, %v626_v6  ;;  %v637_v11 = vrot.slane %v636_v9, 4 }
 0x111   : > { %v629_v12 = vrot.slane %v628_v10, 2  ;;  %v638_v13 = vadd.f32 %v637_v11, %v636_v9 }
 0x113   : > { %v630_v14 = vadd.f32 %v629_v12, %v628_v10  ;;  %v639_v15 = vrot.slane %v638_v13, 2 }
 0x115   : > { %v631_v16 = vrot.slane %v630_v14, 1  ;;  %v640_v17 = vadd.f32 %v639_v15, %v638_v13 }
 0x117   : > { %v632_v18 = vadd.f32 %v631_v16, %v630_v14  ;;  %v641_v19 = vrot.slane %v640_v17, 1 }
 0x119   : > { %633 = vst [vmem:[%s265_s19] sm:$0x1] %v632_v18  ;;  %v642_v20 = vadd.f32 %v641_v19, %v640_v17 }
 0x11b   : > { %643 = vst [vmem:[%s268_s24] sm:$0x1] %v642_v20 }
 0x11c PF: > { %s17_s21 = sadd.s32 1, %s857_s21  }
 0x11d   : > { %p14_p4 = scmp.ge.s32.totalorder %s17_s21, 4  }
 0x11f   :  { %16 = sbr.rel (!%p14_p4) target bundleno = 1 (0x1), region = 90 }

</bundles_post_ra>
